<compile_context>
chip_gen: v7x
topology: tpu7x:2x2x1
jax: 0.10.0
libtpu: 0.0.40
codegen_flags: <defaults>
</compile_context>

<pallas_src>
import math

import jax
import jax.numpy as jnp
from jax.experimental import pallas as pl
from jax.experimental.pallas import tpu as pltpu


def _round_up(x, m):
    return (x + m - 1) // m * m


def _cdiv(a, b):
    return (a + b - 1) // b


def _vmem_capacity_bytes():
    try:
        return int(pltpu.get_tpu_info().vmem_capacity_bytes)
    except Exception:
        return 64 << 20  # conservative fallback (v7x per-TensorCore)


def _fc_kernel(x_ref, ln_g_ref, ln_b_ref, w_ref, b_ref, o_ref, h_ref):
    # x_ref:    (TM, IN)   input rows (resident across the inner j axis)
    # ln_g_ref: (1, IN)    layernorm gamma
    # ln_b_ref: (1, IN)    layernorm beta
    # w_ref:    (IN, TN)   fc weight tile (torch weight transposed)
    # b_ref:    (1, TN)    fc bias tile
    # o_ref:    (TM, TN)   output tile
    # h_ref:    (TM, IN)   scratch holding LN(GELU(x)) in the MXU (weight) dtype
    j = pl.program_id(1)

    # GELU -> Dropout(eval: identity) -> LayerNorm: computed once per row tile
    # (j == 0) and reused for every output tile j > 0 of the same row tile.
    @pl.when(j == 0)
    def _():
        x = x_ref[...].astype(jnp.float32)
        # exact GELU (torch.nn.GELU default): 0.5 * x * (1 + erf(x / sqrt(2)))
        g = 0.5 * x * (1.0 + jax.lax.erf(x * (1.0 / math.sqrt(2.0))))
        # dropout: eval-mode -> identity

        # LayerNorm over the last dim, two-pass stats (torch-style), eps=1e-5.
        mu = jnp.mean(g, axis=-1, keepdims=True)
        d = g - mu
        var = jnp.mean(d * d, axis=-1, keepdims=True)
        h = d * jax.lax.rsqrt(var + 1e-5)
        h = (h * ln_g_ref[...].astype(jnp.float32)
             + ln_b_ref[...].astype(jnp.float32))
        # Single cast into the MXU dtype; reused for every output tile.
        h_ref[...] = h.astype(h_ref.dtype)

    # Linear tile on the MXU: y = h @ W[:, jtile] + b[jtile].
    y = jnp.dot(h_ref[...], w_ref[...], preferred_element_type=jnp.float32)
    o_ref[...] = (y + b_ref[...].astype(jnp.float32)).astype(o_ref.dtype)


def fully_connected(x, ln_gamma, ln_beta, w, b, *, tm=None, tn=None):
    """x: (B, IN), ln_gamma/ln_beta: (IN,), w: (IN, OUT), b: (OUT,)."""
    B, IN = x.shape
    OUT = w.shape[1]

    itx = jnp.dtype(x.dtype).itemsize
    itw = jnp.dtype(w.dtype).itemsize
    ito = itx  # output dtype == input dtype

    # Sublane tile of the input dtype: 8 (f32), 16 (bf16), 32 (int8/fp8).
    sublane = max(8, 32 // itx)

    vmem_cap = _vmem_capacity_bytes()
    budget = int(vmem_cap * 0.8)

    # ---- out tile: 128-lane aligned, prefer tn dividing OUT (no weight pad) --
    if tn is None:
        if OUT % 256 == 0:
            tn_eff = 256
        elif OUT % 128 == 0:
            tn_eff = 128
        elif OUT <= 512:
            tn_eff = OUT            # full last dim: legal block, no padding
        else:
            tn_eff = 256            # ragged large OUT: pad weight once below
            # TODO(synk): masked last-out-tile store would avoid this pad.
    else:
        tn_eff = tn
    OUT_pad = _round_up(OUT, tn_eff)

    # ---- row tile: roofline-driven target, balanced across row tiles --------
    if tm is None:
        tm_target = 512 if vmem_cap >= (100 << 20) else 384  # v5e/v6e vs v7x
    else:
        tm_target = tm
    tm_target = max(sublane,
                    min(_round_up(tm_target, sublane), _round_up(B, sublane)))
    n_row = _cdiv(B, tm_target)
    tm_eff = _round_up(_cdiv(B, n_row), sublane)

    # ---- VMEM working-set estimate; shrink tm (not tn) until it fits --------
    def _need(tm_, tn_, w_bufs):
        return (2 * tm_ * IN * itx          # x tile (double-buffered)
                + w_bufs * IN * tn_ * itw   # weight tiles
                + 2 * tm_ * tn_ * ito       # out tile (double-buffered)
                + tm_ * IN * itw            # h scratch (MXU dtype)
                + 2 * IN * 4 + 2 * tn_ * itw  # ln params + bias (tiny)
                + (2 << 20))                # compiler scratch headroom

    while tm_eff > sublane and _need(tm_eff, tn_eff, 2) > budget:
        tm_eff = max(sublane, _round_up(tm_eff // 2, sublane))

    B_pad = _round_up(B, tm_eff)
    n_row_tiles = B_pad // tm_eff

    # Deeper weight prefetch only pays when the weight is re-streamed across
    # multiple row tiles and the extra IN*tn buffer fits (v5e/v6e headroom).
    use_w3 = (n_row_tiles > 1
              and vmem_cap >= (100 << 20)
              and _need(tm_eff, tn_eff, 3) <= budget)
    w_bufs = 3 if use_w3 else 2
    need = _need(tm_eff, tn_eff, w_bufs)
    vmem_limit = int(min(max(need, 32 << 20), vmem_cap - (4 << 20)))

    # ---- pad operands to tile multiples --------------------------------------
    if B_pad != B:
        x = jnp.pad(x, ((0, B_pad - B), (0, 0)))
    if OUT_pad != OUT:
        # Only reached for large ragged OUT; common cases avoid this HBM copy.
        w = jnp.pad(w, ((0, 0), (0, OUT_pad - OUT)))
        b = jnp.pad(b, ((0, OUT_pad - OUT),))

    ln_gamma2 = ln_gamma.reshape(1, IN)
    ln_beta2 = ln_beta.reshape(1, IN)
    b2 = b.reshape(1, OUT_pad)

    grid = (n_row_tiles, OUT_pad // tn_eff)

    # Weight is re-fetched once per row tile with this loop order.
    cost = pl.CostEstimate(
        flops=2 * B_pad * IN * OUT_pad,
        transcendentals=B_pad * IN,
        bytes_accessed=(B_pad * IN * itx
                        + n_row_tiles * IN * OUT_pad * itw
                        + B_pad * OUT_pad * ito),
    )

    w_index_map = lambda i, j: (0, j)
    if use_w3:
        try:
            w_spec = pl.BlockSpec((IN, tn_eff), w_index_map,
                                  pipeline_mode=pl.Buffered(3))
        except TypeError:  # pipeline_mode unavailable -> default double buffer
            w_spec = pl.BlockSpec((IN, tn_eff), w_index_map)
    else:
        w_spec = pl.BlockSpec((IN, tn_eff), w_index_map)

    out = pl.pallas_call(
        _fc_kernel,
        out_shape=jax.ShapeDtypeStruct((B_pad, OUT_pad), x.dtype),
        grid_spec=pltpu.PrefetchScalarGridSpec(
            num_scalar_prefetch=0,
            grid=grid,
            in_specs=[
                pl.BlockSpec((tm_eff, IN), lambda i, j: (i, 0)),
                pl.BlockSpec((1, IN), lambda i, j: (0, 0)),
                pl.BlockSpec((1, IN), lambda i, j: (0, 0)),
                w_spec,
                pl.BlockSpec((1, tn_eff), lambda i, j: (0, j)),
            ],
            out_specs=pl.BlockSpec((tm_eff, tn_eff), lambda i, j: (i, j)),
            # h scratch lives in the MXU/weight dtype (bf16 when w is bf16).
            scratch_shapes=[pltpu.VMEM((tm_eff, IN), w.dtype)],
        ),
        compiler_params=pltpu.CompilerParams(
            dimension_semantics=("parallel", "arbitrary"),
            vmem_limit_bytes=vmem_limit,
        ),
        cost_estimate=cost,
    )(x, ln_gamma2, ln_beta2, w, b2)

    return out[:B, :OUT]


def _reference(x, ln_gamma, ln_beta, w, b):
    g = 0.5 * x * (1.0 + jax.lax.erf(x / jnp.sqrt(2.0)))
    mu = jnp.mean(g, axis=-1, keepdims=True)
    var = jnp.mean((g - mu) ** 2, axis=-1, keepdims=True)
    h = (g - mu) * jax.lax.rsqrt(var + 1e-5) * ln_gamma + ln_beta
    return h @ w + b


if __name__ == "__main__":
    key = jax.random.PRNGKey(0)
    B, IN, OUT = 16, 32, 64

    kx, kw, kb = jax.random.split(key, 3)
    x = jax.random.normal(kx, (B, IN), dtype=jnp.float32)

    # LayerNorm params: torch default init (gamma=1, beta=0)
    ln_gamma = jnp.ones((IN,), dtype=jnp.float32)
    ln_beta = jnp.zeros((IN,), dtype=jnp.float32)

    # Linear params: deterministic uniform(-1/sqrt(IN), 1/sqrt(IN)) like torch
    bound = 1.0 / math.sqrt(IN)
    w = jax.random.uniform(kw, (IN, OUT), jnp.float32, -bound, bound)
    b = jax.random.uniform(kb, (OUT,), jnp.float32, -bound, bound)

    out = fully_connected(x, ln_gamma, ln_beta, w, b)
    out = jax.block_until_ready(out)

    ref = _reference(x, ln_gamma, ln_beta, w, b)
    assert out.shape == (B, OUT)
    assert jnp.allclose(out, ref, atol=1e-4, rtol=1e-4), float(
        jnp.max(jnp.abs(out - ref)))

    print("KERNEL_OK")
</pallas_src>

<mosaic_0001>
module attributes {stable_mosaic.version = 11 : i64} {
  func.func @_fc_kernel(%arg0: i32, %arg1: i32, %arg2: memref<16x32xf32, #tpu.memory_space<vmem>>, %arg3: memref<1x32xf32, #tpu.memory_space<vmem>>, %arg4: memref<1x32xf32, #tpu.memory_space<vmem>>, %arg5: memref<32x64xf32, #tpu.memory_space<vmem>>, %arg6: memref<1x64xf32, #tpu.memory_space<vmem>>, %arg7: memref<16x64xf32, #tpu.memory_space<vmem>>, %arg8: memref<16x32xf32, #tpu.memory_space<vmem>>) attributes {dimension_semantics = [#tpu.dimension_semantics<parallel>, #tpu.dimension_semantics<arbitrary>], iteration_bounds = array<i64: 1, 1>, scalar_prefetch = 0 : i64, scratch_operands = 1 : i64, tpu.core_type = #tpu.core_type<tc>, window_params = [{transform_indices = @transform_0, window_bounds = array<i64: 16, 32>}, {pipeline_mode = #tpu.pipeline_mode<synchronous>, transform_indices = @transform_1, window_bounds = array<i64: 1, 32>}, {pipeline_mode = #tpu.pipeline_mode<synchronous>, transform_indices = @transform_2, window_bounds = array<i64: 1, 32>}, {transform_indices = @transform_3, window_bounds = array<i64: 32, 64>}, {transform_indices = @transform_4, window_bounds = array<i64: 1, 64>}, {transform_indices = @transform_5, window_bounds = array<i64: 16, 64>}]} {
    %c0_i32 = arith.constant 0 : i32
    %0 = arith.cmpi eq, %arg1, %c0_i32 : i32
    %1 = arith.extui %0 : i1 to i32
    %c0_i32_0 = arith.constant 0 : i32
    %2 = arith.cmpi ne, %1, %c0_i32_0 : i32
    scf.if %2 {
      %c0_8 = arith.constant 0 : index
      %c0_9 = arith.constant 0 : index
      %10 = vector.load %arg2[%c0_8, %c0_9] : memref<16x32xf32, #tpu.memory_space<vmem>>, vector<16x32xf32>
      %cst_10 = arith.constant 5.000000e-01 : f32
      %11 = vector.broadcast %cst_10 : f32 to vector<16x32xf32>
      %12 = arith.mulf %11, %10 : vector<16x32xf32>
      %cst_11 = arith.constant 0.707106769 : f32
      %13 = vector.broadcast %cst_11 : f32 to vector<16x32xf32>
      %14 = arith.mulf %10, %13 : vector<16x32xf32>
      %15 = math.erf %14 : vector<16x32xf32>
      %cst_12 = arith.constant 1.000000e+00 : f32
      %16 = vector.broadcast %cst_12 : f32 to vector<16x32xf32>
      %17 = arith.addf %16, %15 : vector<16x32xf32>
      %18 = arith.mulf %12, %17 : vector<16x32xf32>
      %cst_13 = arith.constant dense<0.000000e+00> : vector<16xf32>
      %19 = vector.multi_reduction <add>, %18, %cst_13 [1] : vector<16x32xf32> to vector<16xf32>
      %20 = vector.shape_cast %19 : vector<16xf32> to vector<16x1xf32>
      %cst_14 = arith.constant 3.200000e+01 : f32
      %21 = vector.broadcast %cst_14 : f32 to vector<16x1xf32>
      %22 = arith.divf %20, %21 : vector<16x1xf32>
      %23 = vector.broadcast %22 : vector<16x1xf32> to vector<16x32xf32>
      %24 = arith.subf %18, %23 : vector<16x32xf32>
      %25 = arith.mulf %24, %24 : vector<16x32xf32>
      %cst_15 = arith.constant dense<0.000000e+00> : vector<16xf32>
      %26 = vector.multi_reduction <add>, %25, %cst_15 [1] : vector<16x32xf32> to vector<16xf32>
      %27 = vector.shape_cast %26 : vector<16xf32> to vector<16x1xf32>
      %cst_16 = arith.constant 3.200000e+01 : f32
      %28 = vector.broadcast %cst_16 : f32 to vector<16x1xf32>
      %29 = arith.divf %27, %28 : vector<16x1xf32>
      %cst_17 = arith.constant 9.99999974E-6 : f32
      %30 = vector.broadcast %cst_17 : f32 to vector<16x1xf32>
      %31 = arith.addf %29, %30 : vector<16x1xf32>
      %32 = math.rsqrt %31 : vector<16x1xf32>
      %33 = vector.broadcast %32 : vector<16x1xf32> to vector<16x32xf32>
      %34 = arith.mulf %24, %33 : vector<16x32xf32>
      %c0_18 = arith.constant 0 : index
      %c0_19 = arith.constant 0 : index
      %35 = vector.load %arg3[%c0_18, %c0_19] : memref<1x32xf32, #tpu.memory_space<vmem>>, vector<1x32xf32>
      %36 = vector.broadcast %35 : vector<1x32xf32> to vector<16x32xf32>
      %37 = arith.mulf %34, %36 : vector<16x32xf32>
      %c0_20 = arith.constant 0 : index
      %c0_21 = arith.constant 0 : index
      %38 = vector.load %arg4[%c0_20, %c0_21] : memref<1x32xf32, #tpu.memory_space<vmem>>, vector<1x32xf32>
      %39 = vector.broadcast %38 : vector<1x32xf32> to vector<16x32xf32>
      %40 = arith.addf %37, %39 : vector<16x32xf32>
      %c0_22 = arith.constant 0 : index
      %c0_23 = arith.constant 0 : index
      %41 = vector.load %arg8[%c0_22, %c0_23] : memref<16x32xf32, #tpu.memory_space<vmem>>, vector<16x32xf32>
      tpu.vector_store %arg8[%c0_22, %c0_23], %40 {strides = array<i32>} : memref<16x32xf32, #tpu.memory_space<vmem>>, vector<16x32xf32>,
    } else {
    }
    %c0 = arith.constant 0 : index
    %c0_1 = arith.constant 0 : index
    %3 = vector.load %arg8[%c0, %c0_1] : memref<16x32xf32, #tpu.memory_space<vmem>>, vector<16x32xf32>
    %c0_2 = arith.constant 0 : index
    %c0_3 = arith.constant 0 : index
    %4 = vector.load %arg5[%c0_2, %c0_3] : memref<32x64xf32, #tpu.memory_space<vmem>>, vector<32x64xf32>
    %cst = arith.constant dense<0.000000e+00> : vector<16x64xf32>
    %5 = tpu.matmul %3, %4, %cst {dimension_numbers = #tpu.dot_dimension_numbers<[1], [0], [0], [1], [0, 0, 1, 1], [], []>} : vector<16x32xf32>, vector<32x64xf32>, vector<16x64xf32> -> vector<16x64xf32>
    %c0_4 = arith.constant 0 : index
    %c0_5 = arith.constant 0 : index
    %6 = vector.load %arg6[%c0_4, %c0_5] : memref<1x64xf32, #tpu.memory_space<vmem>>, vector<1x64xf32>
    %7 = vector.broadcast %6 : vector<1x64xf32> to vector<16x64xf32>
    %8 = arith.addf %5, %7 : vector<16x64xf32>
    %c0_6 = arith.constant 0 : index
    %c0_7 = arith.constant 0 : index
    %9 = vector.load %arg7[%c0_6, %c0_7] : memref<16x64xf32, #tpu.memory_space<vmem>>, vector<16x64xf32>
    tpu.vector_store %arg7[%c0_6, %c0_7], %8 {strides = array<i32>} : memref<16x64xf32, #tpu.memory_space<vmem>>, vector<16x64xf32>,
    return
  }
  func.func @transform_0(%arg0: i32, %arg1: i32) -> (i32, i32) {
    %c0_i32 = arith.constant 0 : i32
    %c0_i32_0 = arith.constant 0 : i32
    return %arg0, %c0_i32 : i32, i32
  }
  func.func @transform_1(%arg0: i32, %arg1: i32) -> (i32, i32) {
    %c0_i32 = arith.constant 0 : i32
    %c0_i32_0 = arith.constant 0 : i32
    %c0_i32_1 = arith.constant 0 : i32
    return %c0_i32, %c0_i32_0 : i32, i32
  }
  func.func @transform_2(%arg0: i32, %arg1: i32) -> (i32, i32) {
    %c0_i32 = arith.constant 0 : i32
    %c0_i32_0 = arith.constant 0 : i32
    %c0_i32_1 = arith.constant 0 : i32
    return %c0_i32, %c0_i32_0 : i32, i32
  }
  func.func @transform_3(%arg0: i32, %arg1: i32) -> (i32, i32) {
    %c0_i32 = arith.constant 0 : i32
    %c0_i32_0 = arith.constant 0 : i32
    return %c0_i32, %arg1 : i32, i32
  }
  func.func @transform_4(%arg0: i32, %arg1: i32) -> (i32, i32) {
    %c0_i32 = arith.constant 0 : i32
    %c0_i32_0 = arith.constant 0 : i32
    return %c0_i32, %arg1 : i32, i32
  }
  func.func @transform_5(%arg0: i32, %arg1: i32) -> (i32, i32) {
    %c0_i32 = arith.constant 0 : i32
    return %arg0, %arg1 : i32, i32
  }
}

</mosaic_0001>

<bundles_post_ra>
// kernel: tpu_custom_call.1
= control target key start
LH: loop header
LB: loop body
LE: loop exit
PB: predicated region body
PF: predicated region fallthrough
CT: control target
= control target key end

     0   :  { %10 = vsyncpa [#allocation4], 0  ;;  %s441_s0 = inlined_call_operand.hbm [shape: f32[16,32], index: 0, kind: input, shape index: {}]   ;;  %s442_s1 = inlined_call_operand.vmem [shape: f32[1,32], index: 1, kind: input, shape index: {}]   ;;  %s443_s2 = inlined_call_operand.vmem [shape: f32[1,32], index: 2, kind: input, shape index: {}]   ;;  %s444_s3 = inlined_call_operand.hbm [shape: f32[32,64], index: 3, kind: input, shape index: {}]   ;;  %s445_s4 = inlined_call_operand.vmem [shape: f32[1,64], index: 4, kind: input, shape index: {}]   ;;  %s446_s5 = inlined_call_operand.hbm [shape: f32[16,64], index: 5, kind: output, shape index: {}]  }
   0x1   :  { %11 = vsyncpa [#allocation7], 0 }
   0x2   :  { %12 = vsyncpa [#allocation5], 0  ;;  %s344_s18 = smov [#allocation3]   ;;  %s272_s22 = scalar_lea.hbm %s441_s0, 256 }
   0x3   :  { %s18_s19 = sshll.u32 %s344_s18, 4  ;;  %p273_p0 = scmp.ne.s32.totalorder %s441_s0, %s272_s22  ;;  %s19_s19 = int_to_ptr.vmem [resolvable:$true] %s18_s19 }
   0x4   :  { %p276_p1 = scmp.lt.u32.totalorder %s272_s22, %s441_s0 }
   0x6   :  { %p278_p2 = pnand %p276_p1, %p273_p0 }
   0x8   :  { %281 = shalt.err (!%p278_p2)
}
   0x9   :  { %s282_s27 = scalar_lea.vmem %s19_s19, 256  ;;  %p287_p4 = scmp.lt.s32.totalorder %s19_s19, %s19_s19 }
   0xa   :  { %p283_p3 = scmp.ne.s32.totalorder %s19_s19, %s282_s27  ;;  %p288_p5 = scmp.lt.s32.totalorder %s282_s27, %s282_s27 }
   0xc   :  { %p289_p6 = por %p288_p5, %p287_p4 }
   0xe   :  { %p290_p7 = pnand %p289_p6, %p283_p3 }
  0x10   :  { %293 = shalt.err (!%p290_p7)
}
  0x11   :  { %s345_s28 = smov 128   ;;  %s346_s29 = smov 8  }
  0x12   :  { %24 = dma.hbm_to_vmem [thread:$0]  %s441_s0, 256, %s19_s19, [#allocation4], %s345_s28, %s345_s28, %s346_s29  }
  0x13   :  { %s347_s7 = smov [#allocation6]   ;;  %s294_s11 = scalar_lea.hbm %s444_s3, 512 }
  0x14   :  { %s34_s8 = sshll.u32 %s347_s7, 4  ;;  %p295_p8 = scmp.ne.s32.totalorder %s444_s3, %s294_s11  ;;  %s35_s8 = int_to_ptr.vmem [resolvable:$true] %s34_s8 }
  0x15   :  { %p298_p9 = scmp.lt.u32.totalorder %s294_s11, %s444_s3 }
  0x17   :  { %p300_p10 = pnand %p298_p9, %p295_p8 }
  0x19   :  { %303 = shalt.err (!%p300_p10)
}
  0x1a   :  { %s304_s16 = scalar_lea.vmem %s35_s8, 512  ;;  %p309_p12 = scmp.lt.s32.totalorder %s35_s8, %s35_s8 }
  0x1b   :  { %p305_p11 = scmp.ne.s32.totalorder %s35_s8, %s304_s16  ;;  %p310_p13 = scmp.lt.s32.totalorder %s304_s16, %s304_s16 }
  0x1d   :  { %p311_p0 = por %p310_p13, %p309_p12 }
  0x1f   :  { %p312_p1 = pnand %p311_p0, %p305_p11 }
  0x21   :  { %315 = shalt.err (!%p312_p1)
}
  0x22   :  { %40 = dma.hbm_to_vmem [thread:$0]  %s444_s3, 512, %s35_s8, [#allocation7], %s345_s28, %s345_s28, %s346_s29  }
  0x23   :  { %338 = dma.done.wait [#allocation4], 256  }
  0x24   :  { %339 = vsyncadd [#allocation4], 4294967040 }
  0x25   :  { %340 = dma.done.wait [#allocation7], 512  }
  0x26   :  { %341 = vsyncadd [#allocation7], 4294966784  ;;  %v53_v0 = vld [vmem:[#allocation3] sm:$0xff]  ;;  %v54_v1 = vld [vmem:[#allocation3 + $0x8] sm:$0xff]  ;;  %vm65_vm0 = vcmask 261120   ;;  %vm208_vm1 = vcmask 523264  }
  0x27   :  { %v57_v2 = vmul.f32 0.70710677, %v53_v0  ;;  %v58_v3 = vmul.f32 0.70710677, %v54_v1  ;;  %v55_v4 = vmul.f32 0.5, %v53_v0  ;;  %v56_v6 = vmul.f32 0.5, %v54_v1 }
  0x28   :  { %v115_v24 = vld [vmem:[#allocation6] sm:$0xff]  ;;  %v116_v25 = vld [vmem:[#allocation6 + $0x8] sm:$0xff]  ;;  %v117_v27 = vld [vmem:[#allocation6 + $0x10] sm:$0xff] }
  0x29   :  { %264 = verf.f32 %v57_v2  ;;  %v251_v26 = vpack.c.bf16 %v116_v25, %v115_v24  ;;  %v118_v28 = vld [vmem:[#allocation6 + $0x18] sm:$0xff]  ;;  %v229_v37 = vld [vmem:[%s442_s1] ss:$0 sm:$0xff] }
  0x2a   :  { %266 = verf.f32 %v58_v3  ;;  %v255_v29 = vpack.c.bf16 %v118_v28, %v117_v27  ;;  %v230_v39 = vld [vmem:[%s443_s2] ss:$0 sm:$0xff]  ;;  %s348_s2 = smov [#allocation8]  }
  0x2b   :  { %252 = vmatprep.subr.bf16.mxu0 %v251_v26  ;;  %v231_v48 = vld [vmem:[%s445_s4] ss:$0 sm:$0xff]  ;;  %s216_s22 = sshll.u32 %s348_s2, 4  ;;  %s217_s22 = int_to_ptr.vmem [resolvable:$true] %s216_s22 }
  0x2c   :  { %254 = vmatpush3.bf16.msra.mxu0 %v251_v26  ;;  %s316_s23 = scalar_lea.vmem %s217_s22, 256  ;;  %p321_p3 = scmp.lt.s32.totalorder %s217_s22, %s217_s22 }
  0x2d   :  { %256 = vmatprep.subr.bf16.mxu0 %v255_v29  ;;  %p317_p2 = scmp.ne.s32.totalorder %s217_s22, %s316_s23  ;;  %p322_p4 = scmp.lt.s32.totalorder %s316_s23, %s316_s23 }
  0x2f   :  { %p323_p5 = por %p322_p4, %p321_p3 }
  0x30   :  { %258 = vmatpush3.bf16.msra.mxu0 %v255_v29 }
  0x31   :  { %p324_p6 = pnand %p323_p5, %p317_p2 }
  0x33   :  { %v265_v5 = vpop.eup %264 }
  0x34   :  { %v267_v7 = vpop.eup %266  ;;  %v61_v8 = vadd.f32 1.0, %v265_v5 }
  0x35   :  { %v62_v9 = vadd.f32 1.0, %v267_v7 }
  0x36   :  { %v63_v10 = vmul.f32 %v61_v8, %v55_v4 }
  0x37   :  { %v64_v11 = vmul.f32 %v62_v9, %v56_v6 }
  0x38   :  { %v66_v12 = vsel %vm65_vm0, %v63_v10, 0.0 }
  0x39   :  { %67 = vadd.xlane.f32.xlu0 %v66_v12  ;;  %v69_v13 = vsel %vm65_vm0, %v64_v11, 0.0 }
  0x3d   :  { %70 = vadd.xlane.f32.xlu0 %v69_v13 }
  0xc6   :  { %v68_v14 = vpop.xlane.xlu0 %67 }
  0xc7   :  { %v73_v15 = vmul.f32 0.03125, %v68_v14 }
  0xc9   :  { %v75_v16 = vsub.f32 %v63_v10, %v73_v15 }
  0xca   :  { %v71_v17 = vpop.xlane.xlu0 %70 }
  0xcb   :  { %v74_v18 = vmul.f32 0.03125, %v71_v17  ;;  %v77_v19 = vmul.f32 %v75_v16, %v75_v16 }
  0xcd   :  { %v76_v20 = vsub.f32 %v64_v11, %v74_v18  ;;  %v79_v21 = vsel %vm65_vm0, %v77_v19, 0.0 }
  0xce   :  { %80 = vadd.xlane.f32.xlu1 %v79_v21 }
  0xcf   :  { %v78_v22 = vmul.f32 %v76_v20, %v76_v20 }
  0xd1   :  { %v82_v23 = vsel %vm65_vm0, %v78_v22, 0.0 }
  0xd2   :  { %83 = vadd.xlane.f32.xlu1 %v82_v23 }
 0x15b   :  { %v81_v30 = vpop.xlane.xlu1 %80 }
 0x15c   :  { %v85_v31 = vmul.f32 0.03125, %v81_v30 }
 0x15e   :  { %v87_v32 = vadd.f32 1e-05, %v85_v31 }
 0x15f   :  { %v84_v33 = vpop.xlane.xlu1 %83 }
 0x160   :  { %268 = vrsqrt.f32 %v87_v32  ;;  %v86_v34 = vmul.f32 0.03125, %v84_v33 }
 0x162   :  { %v88_v35 = vadd.f32 1e-05, %v86_v34 }
 0x164   :  { %270 = vrsqrt.f32 %v88_v35 }
 0x16a   :  { %v269_v36 = vpop.eup %268 }
 0x16b   :  { %v91_v38 = vmul.f32 %v269_v36, %v75_v16 }
 0x16d   :  { %v100_v40 = vmul.f32 %v229_v37, %v91_v38 }
 0x16e   :  { %v271_v41 = vpop.eup %270 }
 0x16f   :  { %v109_v42 = vadd.f32 %v230_v39, %v100_v40  ;;  %v92_v43 = vmul.f32 %v271_v41, %v76_v20 }
 0x171   :  { %111 = vst.msk [vmem:[#allocation2] sm:$0xff] %vm65_vm0, %v109_v42  ;;  %v101_v44 = vmul.f32 %v229_v37, %v92_v43 }
 0x173   :  { %v110_v45 = vadd.f32 %v230_v39, %v101_v44 }
 0x175   :  { %112 = vst.msk [vmem:[#allocation2 + $0x8] sm:$0xff] %vm65_vm0, %v110_v45 }
 0x178   :  { %v113_v46 = vld [vmem:[#allocation2] sm:$0xff] }
 0x179   :  { %248 = vmatprep.mubr.msk.f32.mxu0 %vm65_vm0, %v113_v46 }
 0x17c   :  { %v114_v47 = vld [vmem:[#allocation2 + $0x8] sm:$0xff] }
 0x17d   :  { %249 = vmatmul.mubr.msk.f32.vlgmr.msra.gmra.mrb[0].mxu0 %vm65_vm0, %v114_v47 }
 0x250   :  { %v250_v49 = vpop.f32.mrb[0].mxu0 }
 0x251   :  { %v205_v50 = vadd.f32 %v250_v49, %v231_v48  ;;  %v199_v51 = vpop.f32.mrb[1].mxu0 }
 0x252   :  { %v200_v52 = vadd.f32 %v231_v48, %v199_v51 }
 0x253   :  { %210 = vst.msk [vmem:[#allocation8 + $0x8] sm:$0xff] %vm208_vm1, %v205_v50 }
 0x254   :  { %209 = vst.msk [vmem:[#allocation8] sm:$0xff] %vm208_vm1, %v200_v52 }
 0x255   :  { %327 = shalt.err (!%p324_p6)
}
 0x256   :  { %s328_s4 = scalar_lea.hbm %s446_s5, 256 }
 0x257   :  { %p329_p7 = scmp.ne.s32.totalorder %s446_s5, %s328_s4  ;;  %p332_p8 = scmp.lt.u32.totalorder %s328_s4, %s446_s5 }
 0x259   :  { %p334_p9 = pnand %p332_p8, %p329_p7 }
 0x25b   :  { %337 = shalt.err (!%p334_p9)
}
 0x25c   :  { %222 = dma.vmem_to_hbm [thread:$0]  %s217_s22, 256, %s446_s5, [#allocation5], %s345_s28, %s345_s28, %s346_s29  }
 0x25d   :  { %342 = dma.done.wait [#allocation5], 256  }
 0x25e   :  { %343 = vsyncadd [#allocation5], 4294967040 }
 0x25f   :  { %226 = vsyncpa [#allocation4], 1 }
 0x260   :  { %227 = vsyncpa [#allocation7], 1 }
 0x261   :  { %228 = vsyncpa [#allocation5], 1 }

</bundles_post_ra>
